<compile_context>
chip_gen: v6e
topology: v6e:2x2x1
jax: 0.10.0
libtpu: 0.0.40
codegen_flags: <defaults>
</compile_context>

<pallas_src>
import math

import jax
import jax.numpy as jnp
from jax.experimental import pallas as pl
from jax.experimental.pallas import tpu as pltpu


# ----------------------------------------------------------------------------
# Kernel
# ----------------------------------------------------------------------------
def critic_cql_kernel(obs_ref, acts_ref,
                      w1_ref, b1_ref, w2a_ref, w2b_ref, b2_ref,
                      w3_ref, b3_ref, w4t_ref, b4_ref, out_ref):
    """One batch tile of the CriticCQL MLP.

    obs_ref  : (TILE_B, dim_obs) f32     (batch-tiled)
    acts_ref : (TILE_B, dim_act) f32     (batch-tiled)
    weights  : VMEM-resident (constant index maps)
    out_ref  : (1, TILE_B) f32           (lane-dense: batch on the lane axis)
    """
    obs = obs_ref[...]
    acts = acts_ref[...]

    # FC1 + ReLU.
    h1 = jnp.dot(obs, w1_ref[...], preferred_element_type=jnp.float32) + b1_ref[...]
    h1 = jnp.maximum(h1, 0.0)

    # FC2 on cat(h1, acts): two dots instead of materializing the concat.
    # (No block-diagonal fused weight -> no lane-misaligned slice to realign.)
    h2 = (jnp.dot(h1, w2a_ref[...], preferred_element_type=jnp.float32)
          + jnp.dot(acts, w2b_ref[...], preferred_element_type=jnp.float32)
          + b2_ref[...])
    h2 = jnp.maximum(h2, 0.0)

    # FC3 + ReLU.
    h3 = jnp.dot(h2, w3_ref[...], preferred_element_type=jnp.float32) + b3_ref[...]
    h3 = jnp.maximum(h3, 0.0)

    # FC4, computed transposed: q^T = W4^T @ h3^T, i.e. contract the last dim
    # of both operands (same pattern as attention scores).  The result lands
    # lane-dense as (1, TILE_B) with no in-kernel transpose/relayout; the MXU
    # has huge slack at these widths so the extra padded-N cost is free.
    qt = jax.lax.dot_general(
        w4t_ref[...], h3,
        dimension_numbers=(((1,), (1,)), ((), ())),
        preferred_element_type=jnp.float32)
    out_ref[...] = qt + b4_ref[...]


# ----------------------------------------------------------------------------
# Wrapper
# ----------------------------------------------------------------------------
def critic_cql_forward(obs, acts, kparams, *, tile_b=4096):
    """obs: [B, dim_obs] f32, acts: [B, dim_act] f32 -> [B, 1] f32."""
    B, dim_obs = obs.shape
    dim_act = acts.shape[1]
    (w1, b1, w2a, w2b, b2, w3, b3, w4t, b4) = kparams
    d1 = w1.shape[1]              # 10
    d2 = w2a.shape[1]             # 50

    obs = obs.astype(jnp.float32)
    acts = acts.astype(jnp.float32)

    # --- batch tile size ------------------------------------------------
    # Multiple of 8 sublanes, no bigger than the batch.
    tile_b = max(8, (min(int(tile_b), max(B, 8)) // 8) * 8)
    # Keep >= 2 grid steps when the batch allows it so both v7x TensorCores
    # get work under dimension_semantics=("parallel",).  Costs at most one
    # extra ~0.35us grid step on single-TC chips; no-op once B >> tile_b.
    if B >= 16:
        half = ((B + 1) // 2 + 7) // 8 * 8
        tile_b = min(tile_b, half)
    num_tiles = pl.cdiv(B, tile_b)

    # --- VMEM budget ------------------------------------------------------
    # Every live (tile_b, <=128)-wide f32 block is lane-padded to 512 B/row in
    # VMEM.  Budget: double-buffered obs+acts input blocks plus ~8 row-sized
    # intermediates, clamped to [32 MiB, 64 MiB] so the request stays valid on
    # v7x (64 MiB per TensorCore).  On v5e/v6e (128 MiB VMEM) this can be
    # raised toward ~100 MiB for tile_b >= 8192.
    per_row_bytes = 128 * 4
    est = (2 * 2 + 2 * 2 + 8) * tile_b * per_row_bytes
    vmem_limit = int(min(64 * 1024 * 1024, max(32 * 1024 * 1024, 2 * est)))

    # --- cost estimate (scheduler hint; small but free) -------------------
    flops = 2 * B * (dim_obs * d1 + (d1 + dim_act) * d2 + d2 * d1 + d1 * 1)
    bytes_accessed = (B * (dim_obs + dim_act + 1) * 4
                      + sum(int(p.size) for p in kparams) * 4)
    cost = pl.CostEstimate(flops=int(flops), transcendentals=0,
                           bytes_accessed=int(bytes_accessed))

    blocked = lambda shape: pl.BlockSpec(shape, lambda i: (i, 0))
    resident = lambda shape: pl.BlockSpec(shape, lambda i: (0, 0))

    out3 = pl.pallas_call(
        critic_cql_kernel,
        out_shape=jax.ShapeDtypeStruct((num_tiles, 1, tile_b), jnp.float32),
        grid=(num_tiles,),
        in_specs=[
            blocked((tile_b, dim_obs)),   # obs  (batch-tiled, f32)
            blocked((tile_b, dim_act)),   # acts (batch-tiled, f32)
            resident((dim_obs, d1)),      # W1
            resident((1, d1)),            # b1
            resident((d1, d2)),           # W2a (rows seen by h1)
            resident((dim_act, d2)),      # W2b (rows seen by acts)
            resident((1, d2)),            # b2
            resident((d2, d1)),           # W3
            resident((1, d1)),            # b3
            resident((1, d1)),            # W4^T
            resident((1, 1)),             # b4
        ],
        # Lane-dense output slab: one (1, tile_b) row per grid step.
        out_specs=pl.BlockSpec((None, 1, tile_b), lambda i: (i, 0, 0)),
        compiler_params=pltpu.CompilerParams(
            dimension_semantics=("parallel",),
            vmem_limit_bytes=vmem_limit,
        ),
        cost_estimate=cost,
    )(obs, acts, w1, b1, w2a, w2b, b2, w3, b3, w4t, b4)

    # (num_tiles, 1, tile_b) -> (B, 1); the trailing partial-tile rows (if any)
    # were never valid batch rows and are sliced off here (no wrapper-side pad
    # pass was ever done).
    return out3.reshape(num_tiles * tile_b, 1)[:B]


# ----------------------------------------------------------------------------
# Parameters (PyTorch nn.Linear default init), kernel-side packing, reference
# ----------------------------------------------------------------------------
def init_linear(key, fan_in, fan_out):
    """PyTorch nn.Linear default init: U(-1/sqrt(fan_in), 1/sqrt(fan_in))."""
    kw, kb = jax.random.split(key)
    bound = 1.0 / math.sqrt(fan_in)
    # Stored as [in, out] (transposed from PyTorch's [out, in]).
    w = jax.random.uniform(kw, (fan_in, fan_out), jnp.float32, -bound, bound)
    b = jax.random.uniform(kb, (1, fan_out), jnp.float32, -bound, bound)
    return w, b


def make_params(key, dim_obs, dim_act):
    """Canonical f32 params: (w1, b1, w2, b2, w3, b3, w4, b4)."""
    k1, k2, k3, k4 = jax.random.split(key, 4)
    w1, b1 = init_linear(k1, dim_obs, 10)
    w2, b2 = init_linear(k2, 10 + dim_act, 50)
    w3, b3 = init_linear(k3, 50, 10)
    w4, b4 = init_linear(k4, 10, 1)
    return (w1, b1, w2, b2, w3, b3, w4, b4)


def pack_kernel_params(params, dim_obs, dim_act):
    """Split W2 into its h1/acts halves and transpose W4; everything stays f32."""
    del dim_obs  # shapes are implicit in the canonical params
    (w1, b1, w2, b2, w3, b3, w4, b4) = params
    w2a = w2[:10, :]              # rows seen by h1
    w2b = w2[10:, :]              # rows seen by acts
    w4t = w4.T                    # (1, 10)
    return (w1, b1, w2a, w2b, b2, w3, b3, w4t, b4)


def reference_forward(obs, acts, params):
    """Pure-JAX f32 reference matching the PyTorch module."""
    (w1, b1, w2, b2, w3, b3, w4, b4) = params
    h1 = jax.nn.relu(obs @ w1 + b1)
    combined = jnp.concatenate([h1, acts], axis=1)
    h2 = jax.nn.relu(combined @ w2 + b2)
    h3 = jax.nn.relu(h2 @ w3 + b3)
    return h3 @ w4 + b4


# ----------------------------------------------------------------------------
# Demo / self-test
# ----------------------------------------------------------------------------
if __name__ == "__main__":
    dim_obs, dim_act = 16, 4

    key = jax.random.PRNGKey(0)
    k_obs, k_acts, k_params = jax.random.split(key, 3)
    params = make_params(k_params, dim_obs, dim_act)
    kparams = pack_kernel_params(params, dim_obs, dim_act)

    # Case 1: batch exercising a multi-step grid (tile_b=128 -> grid=(2,)).
    batch = 256
    obs = jax.random.normal(k_obs, (batch, dim_obs), jnp.float32)
    acts = jax.random.normal(k_acts, (batch, dim_act), jnp.float32)

    out = jax.block_until_ready(critic_cql_forward(obs, acts, kparams, tile_b=128))
    ref = reference_forward(obs, acts, params)
    assert out.shape == (batch, 1)
    assert jnp.allclose(out, ref, atol=2e-2, rtol=2e-2), "mismatch vs reference"

    # Case 2: ragged batch exercising the partial last tile (no wrapper pad).
    batch2 = 20
    out2 = jax.block_until_ready(
        critic_cql_forward(obs[:batch2], acts[:batch2], kparams, tile_b=128))
    ref2 = reference_forward(obs[:batch2], acts[:batch2], params)
    assert out2.shape == (batch2, 1)
    assert jnp.allclose(out2, ref2, atol=2e-2, rtol=2e-2), "mismatch vs reference (ragged)"

    # Case 3: default (large) tile path with a single clamped step -> 2 steps.
    out3 = jax.block_until_ready(critic_cql_forward(obs, acts, kparams))
    assert out3.shape == (batch, 1)
    assert jnp.allclose(out3, ref, atol=2e-2, rtol=2e-2), "mismatch vs reference (default tile)"

    print("KERNEL_OK")
</pallas_src>

<mosaic_0001>
module attributes {stable_mosaic.version = 11 : i64} {
  func.func @critic_cql_kernel(%arg0: i32, %arg1: memref<128x16xf32, #tpu.memory_space<vmem>>, %arg2: memref<128x4xf32, #tpu.memory_space<vmem>>, %arg3: memref<16x10xf32, #tpu.memory_space<vmem>>, %arg4: memref<1x10xf32, #tpu.memory_space<vmem>>, %arg5: memref<10x50xf32, #tpu.memory_space<vmem>>, %arg6: memref<4x50xf32, #tpu.memory_space<vmem>>, %arg7: memref<1x50xf32, #tpu.memory_space<vmem>>, %arg8: memref<50x10xf32, #tpu.memory_space<vmem>>, %arg9: memref<1x10xf32, #tpu.memory_space<vmem>>, %arg10: memref<1x10xf32, #tpu.memory_space<vmem>>, %arg11: memref<1x1xf32, #tpu.memory_space<vmem>>, %arg12: memref<1x1x128xf32, #tpu.memory_space<vmem>>) attributes {dimension_semantics = [#tpu.dimension_semantics<parallel>], iteration_bounds = array<i64: 2>, scalar_prefetch = 0 : i64, scratch_operands = 0 : i64, tpu.core_type = #tpu.core_type<tc>, window_params = [{transform_indices = @transform_0, window_bounds = array<i64: 128, 16>}, {transform_indices = @transform_1, window_bounds = array<i64: 128, 4>}, {pipeline_mode = #tpu.pipeline_mode<synchronous>, transform_indices = @transform_2, window_bounds = array<i64: 16, 10>}, {pipeline_mode = #tpu.pipeline_mode<synchronous>, transform_indices = @transform_3, window_bounds = array<i64: 1, 10>}, {pipeline_mode = #tpu.pipeline_mode<synchronous>, transform_indices = @transform_4, window_bounds = array<i64: 10, 50>}, {pipeline_mode = #tpu.pipeline_mode<synchronous>, transform_indices = @transform_5, window_bounds = array<i64: 4, 50>}, {pipeline_mode = #tpu.pipeline_mode<synchronous>, transform_indices = @transform_6, window_bounds = array<i64: 1, 50>}, {pipeline_mode = #tpu.pipeline_mode<synchronous>, transform_indices = @transform_7, window_bounds = array<i64: 50, 10>}, {pipeline_mode = #tpu.pipeline_mode<synchronous>, transform_indices = @transform_8, window_bounds = array<i64: 1, 10>}, {pipeline_mode = #tpu.pipeline_mode<synchronous>, transform_indices = @transform_9, window_bounds = array<i64: 1, 10>}, {pipeline_mode = #tpu.pipeline_mode<synchronous>, transform_indices = @transform_10, window_bounds = array<i64: 1, 1>}, {transform_indices = @transform_11, window_bounds = array<i64: 1, 1, 128>}]} {
    %c0 = arith.constant 0 : index
    %c0_0 = arith.constant 0 : index
    %0 = vector.load %arg1[%c0, %c0_0] : memref<128x16xf32, #tpu.memory_space<vmem>>, vector<128x16xf32>
    %c0_1 = arith.constant 0 : index
    %c0_2 = arith.constant 0 : index
    %1 = vector.load %arg2[%c0_1, %c0_2] : memref<128x4xf32, #tpu.memory_space<vmem>>, vector<128x4xf32>
    %c0_3 = arith.constant 0 : index
    %c0_4 = arith.constant 0 : index
    %2 = vector.load %arg3[%c0_3, %c0_4] : memref<16x10xf32, #tpu.memory_space<vmem>>, vector<16x10xf32>
    %cst = arith.constant dense<0.000000e+00> : vector<128x10xf32>
    %3 = tpu.matmul %0, %2, %cst {dimension_numbers = #tpu.dot_dimension_numbers<[1], [0], [0], [1], [0, 0, 1, 1], [], []>} : vector<128x16xf32>, vector<16x10xf32>, vector<128x10xf32> -> vector<128x10xf32>
    %c0_5 = arith.constant 0 : index
    %c0_6 = arith.constant 0 : index
    %4 = vector.load %arg4[%c0_5, %c0_6] : memref<1x10xf32, #tpu.memory_space<vmem>>, vector<1x10xf32>
    %5 = vector.broadcast %4 : vector<1x10xf32> to vector<128x10xf32>
    %6 = arith.addf %3, %5 : vector<128x10xf32>
    %cst_7 = arith.constant 0.000000e+00 : f32
    %7 = vector.broadcast %cst_7 : f32 to vector<128x10xf32>
    %8 = arith.maximumf %6, %7 : vector<128x10xf32>
    %c0_8 = arith.constant 0 : index
    %c0_9 = arith.constant 0 : index
    %9 = vector.load %arg5[%c0_8, %c0_9] : memref<10x50xf32, #tpu.memory_space<vmem>>, vector<10x50xf32>
    %cst_10 = arith.constant dense<0.000000e+00> : vector<128x50xf32>
    %10 = tpu.matmul %8, %9, %cst_10 {dimension_numbers = #tpu.dot_dimension_numbers<[1], [0], [0], [1], [0, 0, 1, 1], [], []>} : vector<128x10xf32>, vector<10x50xf32>, vector<128x50xf32> -> vector<128x50xf32>
    %c0_11 = arith.constant 0 : index
    %c0_12 = arith.constant 0 : index
    %11 = vector.load %arg6[%c0_11, %c0_12] : memref<4x50xf32, #tpu.memory_space<vmem>>, vector<4x50xf32>
    %cst_13 = arith.constant dense<0.000000e+00> : vector<128x50xf32>
    %12 = tpu.matmul %1, %11, %cst_13 {dimension_numbers = #tpu.dot_dimension_numbers<[1], [0], [0], [1], [0, 0, 1, 1], [], []>} : vector<128x4xf32>, vector<4x50xf32>, vector<128x50xf32> -> vector<128x50xf32>
    %13 = arith.addf %10, %12 : vector<128x50xf32>
    %c0_14 = arith.constant 0 : index
    %c0_15 = arith.constant 0 : index
    %14 = vector.load %arg7[%c0_14, %c0_15] : memref<1x50xf32, #tpu.memory_space<vmem>>, vector<1x50xf32>
    %15 = vector.broadcast %14 : vector<1x50xf32> to vector<128x50xf32>
    %16 = arith.addf %13, %15 : vector<128x50xf32>
    %cst_16 = arith.constant 0.000000e+00 : f32
    %17 = vector.broadcast %cst_16 : f32 to vector<128x50xf32>
    %18 = arith.maximumf %16, %17 : vector<128x50xf32>
    %c0_17 = arith.constant 0 : index
    %c0_18 = arith.constant 0 : index
    %19 = vector.load %arg8[%c0_17, %c0_18] : memref<50x10xf32, #tpu.memory_space<vmem>>, vector<50x10xf32>
    %cst_19 = arith.constant dense<0.000000e+00> : vector<128x10xf32>
    %20 = tpu.matmul %18, %19, %cst_19 {dimension_numbers = #tpu.dot_dimension_numbers<[1], [0], [0], [1], [0, 0, 1, 1], [], []>} : vector<128x50xf32>, vector<50x10xf32>, vector<128x10xf32> -> vector<128x10xf32>
    %c0_20 = arith.constant 0 : index
    %c0_21 = arith.constant 0 : index
    %21 = vector.load %arg9[%c0_20, %c0_21] : memref<1x10xf32, #tpu.memory_space<vmem>>, vector<1x10xf32>
    %22 = vector.broadcast %21 : vector<1x10xf32> to vector<128x10xf32>
    %23 = arith.addf %20, %22 : vector<128x10xf32>
    %cst_22 = arith.constant 0.000000e+00 : f32
    %24 = vector.broadcast %cst_22 : f32 to vector<128x10xf32>
    %25 = arith.maximumf %23, %24 : vector<128x10xf32>
    %c0_23 = arith.constant 0 : index
    %c0_24 = arith.constant 0 : index
    %26 = vector.load %arg10[%c0_23, %c0_24] : memref<1x10xf32, #tpu.memory_space<vmem>>, vector<1x10xf32>
    %cst_25 = arith.constant dense<0.000000e+00> : vector<1x128xf32>
    %27 = tpu.matmul %26, %25, %cst_25 {dimension_numbers = #tpu.dot_dimension_numbers<[1], [1], [0], [0], [0, 0, 1, 0], [], []>} : vector<1x10xf32>, vector<128x10xf32>, vector<1x128xf32> -> vector<1x128xf32>
    %c0_26 = arith.constant 0 : index
    %c0_27 = arith.constant 0 : index
    %28 = vector.load %arg11[%c0_26, %c0_27] : memref<1x1xf32, #tpu.memory_space<vmem>>, vector<1x1xf32>
    %29 = vector.broadcast %28 : vector<1x1xf32> to vector<1x128xf32>
    %30 = arith.addf %27, %29 : vector<1x128xf32>
    %c0_28 = arith.constant 0 : index
    %c0_29 = arith.constant 0 : index
    %c0_30 = arith.constant 0 : index
    %31 = vector.load %arg12[%c0_28, %c0_29, %c0_30] : memref<1x1x128xf32, #tpu.memory_space<vmem>>, vector<1x1x128xf32>
    %32 = vector.shape_cast %31 : vector<1x1x128xf32> to vector<1x128xf32>
    %33 = vector.shape_cast %30 : vector<1x128xf32> to vector<1x1x128xf32>
    tpu.vector_store %arg12[%c0_28, %c0_29, %c0_30], %33 {strides = array<i32>} : memref<1x1x128xf32, #tpu.memory_space<vmem>>, vector<1x1x128xf32>,
    return
  }
  func.func @transform_0(%arg0: i32) -> (i32, i32) {
    %c0_i32 = arith.constant 0 : i32
    %c0_i32_0 = arith.constant 0 : i32
    return %arg0, %c0_i32 : i32, i32
  }
  func.func @transform_1(%arg0: i32) -> (i32, i32) {
    %c0_i32 = arith.constant 0 : i32
    %c0_i32_0 = arith.constant 0 : i32
    return %arg0, %c0_i32 : i32, i32
  }
  func.func @transform_2(%arg0: i32) -> (i32, i32) {
    %c0_i32 = arith.constant 0 : i32
    %c0_i32_0 = arith.constant 0 : i32
    %c0_i32_1 = arith.constant 0 : i32
    return %c0_i32, %c0_i32_0 : i32, i32
  }
  func.func @transform_3(%arg0: i32) -> (i32, i32) {
    %c0_i32 = arith.constant 0 : i32
    %c0_i32_0 = arith.constant 0 : i32
    %c0_i32_1 = arith.constant 0 : i32
    return %c0_i32, %c0_i32_0 : i32, i32
  }
  func.func @transform_4(%arg0: i32) -> (i32, i32) {
    %c0_i32 = arith.constant 0 : i32
    %c0_i32_0 = arith.constant 0 : i32
    %c0_i32_1 = arith.constant 0 : i32
    return %c0_i32, %c0_i32_0 : i32, i32
  }
  func.func @transform_5(%arg0: i32) -> (i32, i32) {
    %c0_i32 = arith.constant 0 : i32
    %c0_i32_0 = arith.constant 0 : i32
    %c0_i32_1 = arith.constant 0 : i32
    return %c0_i32, %c0_i32_0 : i32, i32
  }
  func.func @transform_6(%arg0: i32) -> (i32, i32) {
    %c0_i32 = arith.constant 0 : i32
    %c0_i32_0 = arith.constant 0 : i32
    %c0_i32_1 = arith.constant 0 : i32
    return %c0_i32, %c0_i32_0 : i32, i32
  }
  func.func @transform_7(%arg0: i32) -> (i32, i32) {
    %c0_i32 = arith.constant 0 : i32
    %c0_i32_0 = arith.constant 0 : i32
    %c0_i32_1 = arith.constant 0 : i32
    return %c0_i32, %c0_i32_0 : i32, i32
  }
  func.func @transform_8(%arg0: i32) -> (i32, i32) {
    %c0_i32 = arith.constant 0 : i32
    %c0_i32_0 = arith.constant 0 : i32
    %c0_i32_1 = arith.constant 0 : i32
    return %c0_i32, %c0_i32_0 : i32, i32
  }
  func.func @transform_9(%arg0: i32) -> (i32, i32) {
    %c0_i32 = arith.constant 0 : i32
    %c0_i32_0 = arith.constant 0 : i32
    %c0_i32_1 = arith.constant 0 : i32
    return %c0_i32, %c0_i32_0 : i32, i32
  }
  func.func @transform_10(%arg0: i32) -> (i32, i32) {
    %c0_i32 = arith.constant 0 : i32
    %c0_i32_0 = arith.constant 0 : i32
    %c0_i32_1 = arith.constant 0 : i32
    return %c0_i32, %c0_i32_0 : i32, i32
  }
  func.func @transform_11(%arg0: i32) -> (i32, i32, i32) {
    %c0_i32 = arith.constant 0 : i32
    %c0_i32_0 = arith.constant 0 : i32
    %c0_i32_1 = arith.constant 0 : i32
    return %arg0, %c0_i32, %c0_i32_0 : i32, i32, i32
  }
}

</mosaic_0001>

<bundles_post_ra>
// kernel: tpu_custom_call.1
= control target key start
LH: loop header
LB: loop body
LE: loop exit
PB: predicated region body
PF: predicated region fallthrough
CT: control target
= control target key end

     0   :  { %s2386_s0 = inlined_call_operand.vmem [shape: f32[256,16], index: 0, kind: input, shape index: {}]   ;;  %s2387_s1 = inlined_call_operand.vmem [shape: f32[256,4], index: 1, kind: input, shape index: {}]   ;;  %s2388_s2 = inlined_call_operand.vmem [shape: f32[16,10], index: 2, kind: input, shape index: {}]   ;;  %s2389_s3 = inlined_call_operand.vmem [shape: f32[1,10], index: 3, kind: input, shape index: {}]   ;;  %s2390_s4 = inlined_call_operand.vmem [shape: f32[10,50], index: 4, kind: input, shape index: {}]   ;;  %s2391_s5 = inlined_call_operand.vmem [shape: f32[4,50], index: 5, kind: input, shape index: {}]   ;;  %s2392_s6 = inlined_call_operand.vmem [shape: f32[1,50], index: 6, kind: input, shape index: {}]   ;;  %s2393_s7 = inlined_call_operand.vmem [shape: f32[50,10], index: 7, kind: input, shape index: {}]   ;;  %s2394_s8 = inlined_call_operand.vmem [shape: f32[1,10], index: 8, kind: input, shape index: {}]   ;;  %s2395_s9 = inlined_call_operand.vmem [shape: f32[1,10], index: 9, kind: input, shape index: {}]   ;;  %s2396_s10 = inlined_call_operand.<no memory space> [shape: f32[1,1], index: 10, kind: input, shape index: {}]   ;;  %s2397_s11 = inlined_call_operand.hbm [shape: f32[2,1,128], index: 11, kind: output, shape index: {}]  }
   0x1   :  { %v16_v0 = vstv %s2396_s10 }
   0x2   :  { %17 = vst [vmem:[#allocation2] sm:$0x1] %v16_v0 }
   0x3   :  { %18 = vsyncpa [#allocation4], 0 }
   0x4   :  { %20 = vsyncpa [#allocation4 + $0x1], 0  ;;  %s2059_s19 = smov 0   ;;  %s2061_s20 = smov 0  }
   0x5   :  { %s2063_s21 = smov 0   ;;  %s2065_s22 = smov 0  }
   0x6 LB: > { %s1538_s10 = sadd.s32 4294967295, %s1990_s22   ;;  %s1539_s23 = sadd.s32 4294967294, %s1990_s22   ;;  %s1990_s22 = sphi %s2065_s22, %s2403_s22   ;;  %s1986_s21 = sphi %s2063_s21, %s2402_s21   ;;  %s1982_s20 = sphi %s2061_s20, %s2401_s20   ;;  %s1978_s19 = sphi %s2059_s19, %s2400_s19  }
   0x7   : > { %s2082_s24 = sadd.s32 1, %s1990_s22   ;;  %s274_s25 = sadd.s32 1, %s1986_s21 }
   0x8   : > { %s271_s26 = ssub.s32 %s1990_s22, %s2082_s24  ;;  %p284_p0 = scmp.ne.s32.totalorder %s1986_s21, %s1982_s20 }
   0x9   : > { %p272_p1 = scmp.eq.s32.totalorder %s271_s26, 0  ;;  %p285_p2 = scmp.eq.s32.totalorder %s1538_s10, 1 }
   0xa   : > { %p290_p3 = scmp.ne.s32.totalorder %s1982_s20, %s1978_s19  ;;  %p291_p4 = scmp.eq.s32.totalorder %s1539_s23, 1 }
   0xb   : > { %s2092_s27 = scalar_select %p272_p1, %s1986_s21, %s274_s25  }
   0xc   : > { %p2094_p5 = por %p285_p2, %p284_p0  ;;  %p2098_p6 = por %p291_p4, %p290_p3 }
   0xd   : > { %p1542_p7 = scmp.ge.s32.totalorder %s1990_s22, 1  ;;  %p354_p8 = scmp.lt.s32.totalorder %s1990_s22, 3 }
   0xf   : > { %p355_p9 = pnand %p1542_p7, %p354_p8 }
  0x10   : > { %s2110_s15 = sshll.u32 (!%p355_p9), %s1538_s10, 4  ;;  %s396_s23 = sand.u32 (!%p355_p9), 1, %s1982_s20  }
  0x11   : > { %358 = sbr.rel (%p355_p9) target bundleno = 926 (0x39e), region = 64  ;;  %p399_p10 = scmp.lt.s32.totalorder (!%p355_p9), %s2110_s15, 31 }
  0x12   : > { %s1460_s13 = scalar_lea.sflag (!%p355_p9), [#allocation4], %s396_s23 }
  0x16   : > { %v443_v1 = vld [vmem:[%s2388_s2 + $0x8] sm:$0xff]  ;;  %v442_v2 = vld [vmem:[%s2388_s2] sm:$0xff]  ;;  %vm713_vm0 = vcmask 1043456   ;;  %vm911_vm1 = vcmask 1041408   ;;  %s400_s10 = scalar_select %p399_p10, %s2110_s15, 31  ;;  %vm451_vm2 = vcmask 130048  }
  0x17   : > { %v663_v3 = vld [vmem:[%s2391_s5] sm:$0xf]  ;;  %1730 = vmatprep.subr.mxu0 %v443_v1  ;;  %v662_v4 = vld [vmem:[%s2390_s4 + $0x8] sm:$0x3]  ;;  %vm664_vm3 = vcmask 31744   ;;  %vm862_vm4 = vcmask 80896  }
  0x18   : > { %1731 = vmatpush3.msra.mxu0 %v443_v1  ;;  %1885 = vmatprep.subr.msk.mxu1 %vm713_vm0, %v663_v3  ;;  %s1544_s25 = sshll.u32 %s400_s10, 3  ;;  %v661_v13 = vld [vmem:[%s2390_s4] sm:$0xff]  ;;  %v1105_v38 = vld [vmem:[%s2393_s7 + $0x30] sm:$0x3]  ;;  %v1104_v39 = vld [vmem:[%s2393_s7 + $0x28] sm:$0xff]  ;;  %vm1113_vm5 = vcmask 408576  }
  0x19   : > { %1732 = vmatprep.subr.mxu0 %v442_v2  ;;  %1886 = vmatpush3.msk.msra.mxu1 %vm713_vm0, %v663_v3  ;;  %s2127_s12 = scalar_lea.vmem %s2386_s0, %s1544_s25  ;;  %s2137_s16 = scalar_lea.vmem %s2387_s1, %s1544_s25  ;;  %v1103_v40 = vld [vmem:[%s2393_s7 + $0x20] sm:$0xff]  ;;  %vm1993_vm6 = vmmov 0  }
  0x1a   : > { %1733 = vmatpush3.msra.mxu0 %v442_v2  ;;  %1784 = vmatprep.subr.msk.mxu1 %vm911_vm1, %v662_v4  ;;  %v410_v5 = vld [vmem:[%s2127_s12] sm:$0xff]  ;;  %v411_v6 = vld [vmem:[%s2127_s12 + $0x8] sm:$0xff]  ;;  %v412_v7 = vld [vmem:[%s2127_s12 + $0x10] sm:$0xff]  ;;  %s397_s10 = scalar_lea.vmem [#allocation3], %s396_s23 }
  0x1b   : > { %1758 = vmatprep.subr.msk.mxu0 %vm713_vm0, %v663_v3  ;;  %1734 = vmatprep.mubr.msk.f32.mxu0 %vm451_vm2, %v410_v5  ;;  %v413_v8 = vld [vmem:[%s2127_s12 + $0x18] sm:$0xff]  ;;  %v414_v9 = vld [vmem:[%s2127_s12 + $0x20] sm:$0xff]  ;;  %v435_v11 = vld [vmem:[%s2137_s16 + $0x48] sm:$0xff]  ;;  %s1472_s25 = sshll.u32 %s397_s10, 4  ;;  %s1473_s25 = int_to_ptr.vmem [resolvable:$true] %s1472_s25 }
  0x1c   : > { %1735 = vmatmul.mubr.msk.f32.vlgmr.msra.gmra.mxu0 %vm451_vm2, %v411_v6  ;;  %v434_v10 = vld [vmem:[%s2137_s16 + $0x40] sm:$0xff]  ;;  %v436_v12 = vld [vmem:[%s2137_s16 + $0x50] sm:$0xff]  ;;  %v415_v14 = vld [vmem:[%s2127_s12 + $0x28] sm:$0xff]  ;;  %s1930_s14 = scalar_lea.vmem %s1473_s25, 16 }
  0x1d   : > { %1737 = vmatprep.mubr.msk.f32.mxu0 %vm451_vm2, %v412_v7  ;;  %1759 = vmatpush3.msk.msra.mxu0 %vm713_vm0, %v663_v3  ;;  %v416_v15 = vld [vmem:[%s2127_s12 + $0x30] sm:$0xff]  ;;  %v437_v16 = vld [vmem:[%s2137_s16 + $0x58] sm:$0xff]  ;;  %v438_v17 = vld [vmem:[%s2137_s16 + $0x60] sm:$0xff]  ;;  %p1931_p11 = scmp.ne.s32.totalorder %s1473_s25, %s1930_s14 }
  0x1e   : > { %1772 = vmatprep.mubr.msk.f32.mxu1 %vm664_vm3, %v434_v10  ;;  %v417_v18 = vld [vmem:[%s2127_s12 + $0x38] sm:$0xff]  ;;  %v418_v19 = vld [vmem:[%s2127_s12 + $0x40] sm:$0xff]  ;;  %v439_v20 = vld [vmem:[%s2137_s16 + $0x68] sm:$0xff]  ;;  %1812 = vmatprep.subr.msk.mxu0 %vm911_vm1, %v1105_v38 }
  0x1f   : > { %1773 = vmatmul.mubr.msk.f32.vlgmr.msra.gmra.mxu1 %vm664_vm3, %v435_v11  ;;  %v419_v21 = vld [vmem:[%s2127_s12 + $0x48] sm:$0xff]  ;;  %v420_v22 = vld [vmem:[%s2127_s12 + $0x50] sm:$0xff]  ;;  %v421_v23 = vld [vmem:[%s2127_s12 + $0x58] sm:$0xff]  ;;  %p1932_p12 = pnand %p1931_p11, %p2094_p5 }
  0x20   : > { %1738 = vmatmul.mubr.msk.f32.gmra.mxu0 %vm451_vm2, %v413_v8  ;;  %1785 = vmatpush3.msk.msra.mxu1 %vm911_vm1, %v662_v4  ;;  %v422_v24 = vld [vmem:[%s2127_s12 + $0x60] sm:$0xff]  ;;  %v423_v25 = vld [vmem:[%s2127_s12 + $0x68] sm:$0xff]  ;;  %v424_v26 = vld [vmem:[%s2127_s12 + $0x70] sm:$0xff] }
  0x21   : > { %1740 = vmatprep.mubr.msk.f32.mxu0 %vm451_vm2, %v414_v9  ;;  %1775 = vmatprep.mubr.msk.f32.mxu1 %vm664_vm3, %v436_v12  ;;  %v425_v27 = vld [vmem:[%s2127_s12 + $0x78] sm:$0xff]  ;;  %v440_v28 = vld [vmem:[%s2137_s16 + $0x70] sm:$0xff]  ;;  %v426_v30 = vld [vmem:[%s2137_s16] sm:$0xff]  ;;  %s2351_s12 = scalar_lea.hbm %s2397_s11, %s2110_s15  ;;  %p1933_p13 = pneg %p1932_p12 }
  0x22   : > { %1786 = vmatprep.subr.mxu1 %v661_v13  ;;  %v441_v29 = vld [vmem:[%s2137_s16 + $0x78] sm:$0xff]  ;;  %v427_v31 = vld [vmem:[%s2137_s16 + $0x8] sm:$0xff]  ;;  %v428_v32 = vld [vmem:[%s2137_s16 + $0x10] sm:$0xff] }
  0x23   : > { %1787 = vmatpush3.msra.mxu1 %v661_v13  ;;  %v429_v33 = vld [vmem:[%s2137_s16 + $0x18] sm:$0xff]  ;;  %v430_v34 = vld [vmem:[%s2137_s16 + $0x20] sm:$0xff]  ;;  %v431_v35 = vld [vmem:[%s2137_s16 + $0x28] sm:$0xff] }
  0x24   : > { %1741 = vmatmul.mubr.msk.f32.gmra.mxu0 %vm451_vm2, %v415_v14  ;;  %1776 = vmatmul.mubr.msk.f32.gmra.mxu1 %vm664_vm3, %v437_v16  ;;  %v432_v36 = vld [vmem:[%s2137_s16 + $0x30] sm:$0xff]  ;;  %v433_v37 = vld [vmem:[%s2137_s16 + $0x38] sm:$0xff]  ;;  %v1547_v41 = vld [vmem:[%s2389_s3] ss:$0 sm:$0xff]  ;;  %s1995_s16 = smov [#allocation3]  }
  0x25   : > { %1743 = vmatprep.mubr.msk.f32.mxu0 %vm451_vm2, %v416_v15  ;;  %1778 = vmatprep.mubr.msk.f32.mxu1 %vm664_vm3, %v438_v17  ;;  %s1934_s17 = sshll.u32 %s1995_s16, 4  ;;  %s1935_s17 = int_to_ptr.vmem [resolvable:$false] %s1934_s17 }
  0x26   : > { %s1936_s18 = scalar_lea.vmem %s1935_s17, 32  ;;  %p1937_p0 = scmp.lt.s32.totalorder %s1473_s25, %s1935_s17 }
  0x27   : > { %p1938_p1 = scmp.lt.s32.totalorder %s1936_s18, %s1930_s14 }
  0x28   : > { %1744 = vmatmul.mubr.msk.f32.gmra.mxu0 %vm451_vm2, %v417_v18  ;;  %1779 = vmatmul.mubr.msk.f32.gmra.mxu1 %vm664_vm3, %v439_v20 }
  0x29   : > { %1746 = vmatprep.mubr.msk.f32.mxu0 %vm451_vm2, %v418_v19  ;;  %1781 = vmatprep.mubr.msk.f32.mxu1 %vm664_vm3, %v440_v28  ;;  %v1100_v28 = vld [vmem:[%s2393_s7 + $0x8] sm:$0xff]  ;;  %p1939_p2 = por %p1938_p1, %p1937_p0 }
  0x2b   : > { %p1940_p3 = pnand %p1939_p2, %p1933_p13 }
  0x2c   : > { %1747 = vmatmul.mubr.msk.f32.gmra.mxu0 %vm451_vm2, %v419_v21  ;;  %1782 = vmatmul.mubr.msk.f32.gmra.mxu1 %vm664_vm3, %v441_v29  ;;  %v1099_v29 = vld [vmem:[%s2393_s7] sm:$0xff] }
  0x2d   : > { %1749 = vmatprep.mubr.msk.f32.mxu0 %vm451_vm2, %v420_v22 }
  0x30   : > { %1750 = vmatmul.mubr.msk.f32.gmra.mxu0 %vm451_vm2, %v421_v23 }
  0x31   : > { %1752 = vmatprep.mubr.msk.f32.mxu0 %vm451_vm2, %v422_v24 }
  0x34   : > { %1753 = vmatmul.mubr.msk.f32.gmra.mxu0 %vm451_vm2, %v423_v25 }
  0x35   : > { %1755 = vmatprep.mubr.msk.f32.mxu0 %vm451_vm2, %v424_v26  ;;  %v1102_v26 = vld [vmem:[%s2393_s7 + $0x18] sm:$0xff] }
  0x38   : > { %1756 = vmatmul.mubr.msk.f32.gmra.mxu0 %vm451_vm2, %v425_v27  ;;  %v1101_v27 = vld [vmem:[%s2393_s7 + $0x10] sm:$0xff] }
  0x39   : > { %1760 = vmatprep.mubr.msk.f32.mxu0 %vm664_vm3, %v426_v30 }
  0x3c   : > { %1761 = vmatmul.mubr.msk.f32.vlgmr.msra.gmra.mxu0 %vm664_vm3, %v427_v31 }
  0x3d   : > { %1763 = vmatprep.mubr.msk.f32.mxu0 %vm664_vm3, %v428_v32  ;;  %1813 = vmatpush3.msk.msra.mxu0 %vm911_vm1, %v1105_v38 }
  0x3e   : > { %1814 = vmatprep.subr.mxu0 %v1104_v39 }
  0x3f   : > { %1815 = vmatpush3.msra.mxu0 %v1104_v39 }
  0x40   : > { %1764 = vmatmul.mubr.msk.f32.gmra.mxu0 %vm664_vm3, %v429_v33  ;;  %1816 = vmatprep.subr.mxu0 %v1103_v40 }
  0x41   : > { %1766 = vmatprep.mubr.msk.f32.mxu0 %vm664_vm3, %v430_v34  ;;  %1817 = vmatpush3.msra.mxu0 %v1103_v40 }
  0x42   : > { %1818 = vmatprep.subr.mxu0 %v1102_v26 }
  0x43   : > { %1819 = vmatpush3.msra.mxu0 %v1102_v26 }
  0x44   : > { %1767 = vmatmul.mubr.msk.f32.gmra.mxu0 %vm664_vm3, %v431_v35  ;;  %1820 = vmatprep.subr.mxu0 %v1101_v27 }
  0x45   : > { %1769 = vmatprep.mubr.msk.f32.mxu0 %vm664_vm3, %v432_v36  ;;  %1821 = vmatpush3.msra.mxu0 %v1101_v27 }
  0x46   : > { %1822 = vmatprep.subr.mxu0 %v1100_v28 }
  0x47   : > { %1823 = vmatpush3.msra.mxu0 %v1100_v28 }
  0x48   : > { %1770 = vmatmul.mubr.msk.f32.gmra.mxu0 %vm664_vm3, %v433_v37  ;;  %1824 = vmatprep.subr.mxu0 %v1099_v29 }
  0x49   : > { %1825 = vmatpush3.msra.mxu0 %v1099_v29 }
  0xdc   : > { %v1736_v42 = vpop.f32.mrf.mxu0 }
  0xdd   : > { %v572_v43 = vadd.f32 %v1736_v42, %v1547_v41 }
  0xde   : > { %v566_v44 = vpop.f32.mrf.mxu0 }
  0xdf   : > { %v567_v45 = vadd.f32 %v1547_v41, %v566_v44  ;;  %v646_v48 = vmax.f32 %v572_v43, 0.0  ;;  %v1774_v30 = vpop.f32.mrf.mxu1  ;;  %v2258_v44 = vld [vmem:[%s2392_s6] ss:$0 sm:$0xff] }
  0xe0   : > { %v1739_v46 = vpop.f32.mrf.mxu0 }
  0xe1   : > { %v645_v47 = vmax.f32 %v567_v45, 0.0  ;;  %v582_v49 = vadd.f32 %v1739_v46, %v1547_v41  ;;  %v823_v31 = vpop.f32.mrf.mxu1 }
  0xe2   : > { %v576_v50 = vpop.f32.mrf.mxu0 }
  0xe3   : > { %v577_v51 = vadd.f32 %v1547_v41, %v576_v50  ;;  %1788 = vmatprep.mubr.msk.f32.mxu1 %vm862_vm4, %v645_v47  ;;  %v648_v54 = vmax.f32 %v582_v49, 0.0 }
  0xe4   : > { %v1742_v52 = vpop.f32.mrf.mxu0  ;;  %1789 = vmatmul.mubr.msk.f32.vlgmr.msra.gmra.mxu1 %vm862_vm4, %v646_v48  ;;  %v1777_v32 = vpop.f32.mrf.mxu1 }
  0xe5   : > { %v647_v53 = vmax.f32 %v577_v51, 0.0  ;;  %v592_v55 = vadd.f32 %v1742_v52, %v1547_v41 }
  0xe6   : > { %v586_v56 = vpop.f32.mrf.mxu0  ;;  %v2245_v33 = vpop.f32.mrf.mxu1 }
  0xe7   : > { %v587_v57 = vadd.f32 %v1547_v41, %v586_v56  ;;  %1791 = vmatprep.mubr.msk.f32.mxu1 %vm862_vm4, %v647_v53  ;;  %v650_v60 = vmax.f32 %v592_v55, 0.0 }
  0xe8   : > { %v1745_v58 = vpop.f32.mrf.mxu0  ;;  %1792 = vmatmul.mubr.msk.f32.gmra.mxu1 %vm862_vm4, %v648_v54  ;;  %v2247_v34 = vpop.f32.mrf.mxu1 }
  0xe9   : > { %v649_v59 = vmax.f32 %v587_v57, 0.0  ;;  %v602_v61 = vadd.f32 %v1745_v58, %v1547_v41 }
  0xea   : > { %v596_v62 = vpop.f32.mrf.mxu0  ;;  %v2249_v36 = vpop.f32.mrf.mxu1 }
  0xeb   : > { %v597_v63 = vadd.f32 %v1547_v41, %v596_v62  ;;  %1794 = vmatprep.mubr.msk.f32.mxu1 %vm862_vm4, %v649_v59  ;;  %v652_v2 = vmax.f32 %v602_v61, 0.0 }
  0xec   : > { %v1748_v0 = vpop.f32.mrf.mxu0  ;;  %1795 = vmatmul.mubr.msk.f32.gmra.mxu1 %vm862_vm4, %v650_v60  ;;  %v2251_v38 = vpop.f32.mrf.mxu1 }
  0xed   : > { %v651_v1 = vmax.f32 %v597_v63, 0.0  ;;  %v612_v3 = vadd.f32 %v1748_v0, %v1547_v41 }
  0xee   : > { %v606_v4 = vpop.f32.mrf.mxu0  ;;  %v2253_v40 = vpop.f32.mrf.mxu1 }
  0xef   : > { %v607_v5 = vadd.f32 %v1547_v41, %v606_v4  ;;  %1797 = vmatprep.mubr.msk.f32.mxu1 %vm862_vm4, %v651_v1  ;;  %v654_v8 = vmax.f32 %v612_v3, 0.0 }
  0xf0   : > { %v1751_v6 = vpop.f32.mrf.mxu0  ;;  %1798 = vmatmul.mubr.msk.f32.gmra.mxu1 %vm862_vm4, %v652_v2 }
  0xf1   : > { %v653_v7 = vmax.f32 %v607_v5, 0.0  ;;  %v622_v9 = vadd.f32 %v1751_v6, %v1547_v41 }
  0xf2   : > { %v616_v10 = vpop.f32.mrf.mxu0 }
  0xf3   : > { %v617_v11 = vadd.f32 %v1547_v41, %v616_v10  ;;  %1800 = vmatprep.mubr.msk.f32.mxu1 %vm862_vm4, %v653_v7  ;;  %v656_v14 = vmax.f32 %v622_v9, 0.0 }
  0xf4   : > { %v1754_v12 = vpop.f32.mrf.mxu0  ;;  %1801 = vmatmul.mubr.msk.f32.gmra.mxu1 %vm862_vm4, %v654_v8 }
  0xf5   : > { %v655_v13 = vmax.f32 %v617_v11, 0.0  ;;  %v632_v15 = vadd.f32 %v1754_v12, %v1547_v41 }
  0xf6   : > { %v626_v16 = vpop.f32.mrf.mxu0 }
  0xf7   : > { %v627_v17 = vadd.f32 %v1547_v41, %v626_v16  ;;  %1803 = vmatprep.mubr.msk.f32.mxu1 %vm862_vm4, %v655_v13  ;;  %v658_v20 = vmax.f32 %v632_v15, 0.0 }
  0xf8   : > { %v1757_v18 = vpop.f32.mrf.mxu0  ;;  %1804 = vmatmul.mubr.msk.f32.gmra.mxu1 %vm862_vm4, %v656_v14 }
  0xf9   : > { %v657_v19 = vmax.f32 %v627_v17, 0.0  ;;  %v642_v21 = vadd.f32 %v1757_v18, %v1547_v41 }
  0xfa   : > { %v636_v22 = vpop.f32.mrf.mxu0 }
  0xfb   : > { %v637_v23 = vadd.f32 %v1547_v41, %v636_v22  ;;  %1806 = vmatprep.mubr.msk.f32.mxu1 %vm862_vm4, %v657_v19  ;;  %v660_v25 = vmax.f32 %v642_v21, 0.0 }
  0xfc   : > { %1807 = vmatmul.mubr.msk.f32.gmra.mxu1 %vm862_vm4, %v658_v20  ;;  %v1762_v35 = vpop.f32.mrf.mxu0 }
  0xfd   : > { %v659_v24 = vmax.f32 %v637_v23, 0.0 }
  0xfe   : > { %v783_v37 = vpop.f32.mrf.mxu0 }
  0xff   : > { %1809 = vmatprep.mubr.msk.f32.mxu1 %vm862_vm4, %v659_v24 }
 0x100   : > { %1810 = vmatmul.mubr.msk.f32.gmra.mxu1 %vm862_vm4, %v660_v25  ;;  %v1765_v39 = vpop.f32.mrf.mxu0 }
 0x102   : > { %v793_v41 = vpop.f32.mrf.mxu0 }
 0x104   : > { %v1768_v46 = vpop.f32.mrf.mxu0 }
 0x106   : > { %v803_v53 = vpop.f32.mrf.mxu0 }
 0x108   : > { %v1771_v61 = vpop.f32.mrf.mxu0 }
 0x10a   : > { %v813_v6 = vpop.f32.mrf.mxu0 }
 0x1a4   : > { %v1790_v42 = vpop.f32.mrf.mxu1 }
 0x1a5   : > { %v987_v43 = vadd.f32 %v1790_v42, %v1762_v35 }
 0x1a6   : > { %v981_v45 = vpop.f32.mrf.mxu1 }
 0x1a7   : > { %v982_v47 = vadd.f32 %v981_v45, %v783_v37  ;;  %v1068_v48 = vadd.f32 %v2258_v44, %v987_v43 }
 0x1a8   : > { %v1793_v49 = vpop.f32.mrf.mxu1 }
 0x1a9   : > { %v1067_v50 = vadd.f32 %v2258_v44, %v982_v47  ;;  %v997_v51 = vadd.f32 %v1793_v49, %v1765_v39  ;;  %v1084_v56 = vmax.f32 %v1068_v48, 0.0 }
 0x1aa   : > { %v991_v52 = vpop.f32.mrf.mxu1 }
 0x1ab   : > { %v1083_v54 = vmax.f32 %v1067_v50, 0.0  ;;  %v992_v55 = vadd.f32 %v991_v52, %v793_v41  ;;  %v1070_v57 = vadd.f32 %v2258_v44, %v997_v51  ;;  %v1994_v50 = vmov 0  }
 0x1ac   : > { %v1796_v58 = vpop.f32.mrf.mxu1  ;;  %1929 = vset.pattern.permute.xlu0 %v1994_v50 }
 0x1ad   : > { %v1069_v59 = vadd.f32 %v2258_v44, %v992_v55  ;;  %v1007_v60 = vadd.f32 %v1796_v58, %v1768_v46  ;;  %1826 = vmatprep.mubr.msk.f32.mxu0 %vm1113_vm5, %v1083_v54  ;;  %v1086_v1 = vmax.f32 %v1070_v57, 0.0 }
 0x1ae   : > { %v1001_v62 = vpop.f32.mrf.mxu1  ;;  %1827 = vmatmul.mubr.msk.f32.vlgmr.msra.gmra.mxu0 %vm1113_vm5, %v1084_v56 }
 0x1af   : > { %v1085_v63 = vmax.f32 %v1069_v59, 0.0  ;;  %v1002_v0 = vadd.f32 %v1001_v62, %v803_v53  ;;  %v1072_v2 = vadd.f32 %v2258_v44, %v1007_v60 }
 0x1b0   : > { %v1799_v3 = vpop.f32.mrf.mxu1 }
 0x1b1   : > { %v1071_v4 = vadd.f32 %v2258_v44, %v1002_v0  ;;  %v1017_v5 = vadd.f32 %v1799_v3, %v1771_v61  ;;  %1829 = vmatprep.mubr.msk.f32.mxu0 %vm1113_vm5, %v1085_v63  ;;  %v1088_v10 = vmax.f32 %v1072_v2, 0.0  ;;  %v1599_v0 = vld [vmem:[%s2394_s8] ss:$0 sm:$0xff] }
 0x1b2   : > { %v1011_v7 = vpop.f32.mrf.mxu1  ;;  %1830 = vmatmul.mubr.msk.f32.gmra.mxu0 %vm1113_vm5, %v1086_v1 }
 0x1b3   : > { %v1087_v8 = vmax.f32 %v1071_v4, 0.0  ;;  %v1012_v9 = vadd.f32 %v1011_v7, %v813_v6  ;;  %v1074_v11 = vadd.f32 %v2258_v44, %v1017_v5 }
 0x1b4   : > { %v1802_v12 = vpop.f32.mrf.mxu1 }
 0x1b5   : > { %v1073_v13 = vadd.f32 %v2258_v44, %v1012_v9  ;;  %v1027_v14 = vadd.f32 %v1802_v12, %v1774_v30  ;;  %1832 = vmatprep.mubr.msk.f32.mxu0 %vm1113_vm5, %v1087_v8  ;;  %v1090_v18 = vmax.f32 %v1074_v11, 0.0 }
 0x1b6   : > { %v1021_v15 = vpop.f32.mrf.mxu1  ;;  %1833 = vmatmul.mubr.msk.f32.gmra.mxu0 %vm1113_vm5, %v1088_v10 }
 0x1b7   : > { %v1089_v16 = vmax.f32 %v1073_v13, 0.0  ;;  %v1022_v17 = vadd.f32 %v1021_v15, %v823_v31  ;;  %v1076_v19 = vadd.f32 %v2258_v44, %v1027_v14 }
 0x1b8   : > { %v1805_v20 = vpop.f32.mrf.mxu1 }
 0x1b9   : > { %v1075_v21 = vadd.f32 %v2258_v44, %v1022_v17  ;;  %v1037_v22 = vadd.f32 %v1805_v20, %v1777_v32  ;;  %1835 = vmatprep.mubr.msk.f32.mxu0 %vm1113_vm5, %v1089_v16  ;;  %v1092_v26 = vmax.f32 %v1076_v19, 0.0 }
 0x1ba   : > { %v1031_v23 = vpop.f32.mrf.mxu1  ;;  %1836 = vmatmul.mubr.msk.f32.gmra.mxu0 %vm1113_vm5, %v1090_v18 }
 0x1bb   : > { %v1091_v24 = vmax.f32 %v1075_v21, 0.0  ;;  %v1032_v25 = vadd.f32 %v1031_v23, %v2245_v33  ;;  %v1078_v27 = vadd.f32 %v2258_v44, %v1037_v22 }
 0x1bc   : > { %v1808_v28 = vpop.f32.mrf.mxu1 }
 0x1bd   : > { %v1077_v29 = vadd.f32 %v2258_v44, %v1032_v25  ;;  %v1047_v30 = vadd.f32 %v1808_v28, %v2247_v34  ;;  %1838 = vmatprep.mubr.msk.f32.mxu0 %vm1113_vm5, %v1091_v24  ;;  %v1094_v37 = vmax.f32 %v1078_v27, 0.0 }
 0x1be   : > { %v1041_v31 = vpop.f32.mrf.mxu1  ;;  %1839 = vmatmul.mubr.msk.f32.gmra.mxu0 %vm1113_vm5, %v1092_v26 }
 0x1bf   : > { %v1093_v32 = vmax.f32 %v1077_v29, 0.0  ;;  %v1042_v35 = vadd.f32 %v1041_v31, %v2249_v36  ;;  %v1080_v39 = vadd.f32 %v2258_v44, %v1047_v30 }
 0x1c0   : > { %v1811_v33 = vpop.f32.mrf.mxu1 }
 0x1c1   : > { %v1079_v41 = vadd.f32 %v2258_v44, %v1042_v35  ;;  %v1057_v42 = vadd.f32 %v1811_v33, %v2251_v38  ;;  %1841 = vmatprep.mubr.msk.f32.mxu0 %vm1113_vm5, %v1093_v32  ;;  %v1096_v46 = vmax.f32 %v1080_v39, 0.0  ;;  %v1992_v38 = vmov 0.0   ;;  %v1326_v39 = vld [vmem:[%s2395_s9] sm:$0x1] }
 0x1c2   : > { %v1051_v43 = vpop.f32.mrf.mxu1  ;;  %1842 = vmatmul.mubr.msk.f32.gmra.mxu0 %vm1113_vm5, %v1094_v37  ;;  %1850 = vmatprep.subr.mxu1 %v1992_v38  ;;  %v1333_v33 = vlaneseq }
 0x1c3   : > { %v1095_v34 = vmax.f32 %v1079_v41, 0.0  ;;  %v1052_v45 = vadd.f32 %v1051_v43, %v2253_v40  ;;  %v1082_v47 = vadd.f32 %v2258_v44, %v1057_v42  ;;  %1882 = vmatprep.mubr.msk.f32.mxu1 %vm1993_vm6, %v1992_v38  ;;  %v1327_v40 = vld [vmem:[#allocation2] sm:$0x1] }
 0x1c4   : > { %1330 = vperm.xlu0 %1929, %v1327_v40   ;;  %v1334_v41 = vshrl.u32 %v1333_v33, 7 }
 0x1c5   : > { %v1081_v36 = vadd.f32 %v2258_v44, %v1052_v45  ;;  %1844 = vmatprep.mubr.msk.f32.mxu0 %vm1113_vm5, %v1095_v34  ;;  %v1098_v49 = vmax.f32 %v1082_v47, 0.0 }
 0x1c6   : > { %1845 = vmatmul.mubr.msk.f32.gmra.mxu0 %vm1113_vm5, %v1096_v46  ;;  %v1335_v42 = vsub.s32 0, %v1334_v41 }
 0x1c7   : > { %v1097_v48 = vmax.f32 %v1081_v36, 0.0 }
 0x1c9   : > { %1847 = vmatprep.mubr.msk.f32.mxu0 %vm1113_vm5, %v1097_v48 }
 0x1ca   : > { %1848 = vmatmul.mubr.msk.f32.gmra.mxu0 %vm1113_vm5, %v1098_v49 }
 0x23f   : > { %v1331_v43 = vpop.permute.xlu0 %1330 }
 0x240   : > { %v1336_v34 = vrot.slane %v1331_v43, %v1335_v42 }
 0x26e   : > { %v2299_v44 = vpop.f32.mrf.mxu0 }
 0x26f   : > { %v1237_v30 = vadd.f32 %v2299_v44, %v1599_v0 }
 0x270   : > { %v2301_v51 = vpop.f32.mrf.mxu0 }
 0x271   : > { %v1311_v32 = vmax.f32 %v1237_v30, 0.0  ;;  %v1232_v35 = vadd.f32 %v1599_v0, %v2301_v51 }
 0x272   : > { %v1831_v52 = vpop.f32.mrf.mxu0 }
 0x273   : > { %v1247_v26 = vadd.f32 %v1831_v52, %v1599_v0  ;;  %v1310_v37 = vmax.f32 %v1232_v35, 0.0 }
 0x274   : > { %v2303_v53 = vpop.f32.mrf.mxu0 }
 0x275   : > { %v1313_v28 = vmax.f32 %v1247_v26, 0.0  ;;  %v1242_v29 = vadd.f32 %v1599_v0, %v2303_v53 }
 0x276   : > { %v1834_v54 = vpop.f32.mrf.mxu0 }
 0x277   : > { %v1257_v22 = vadd.f32 %v1834_v54, %v1599_v0  ;;  %v1312_v31 = vmax.f32 %v1242_v29, 0.0 }
 0x278   : > { %v1251_v55 = vpop.f32.mrf.mxu0 }
 0x279   : > { %v1315_v24 = vmax.f32 %v1257_v22, 0.0  ;;  %v1252_v25 = vadd.f32 %v1599_v0, %v1251_v55 }
 0x27a   : > { %v1837_v56 = vpop.f32.mrf.mxu0 }
 0x27b   : > { %v1267_v18 = vadd.f32 %v1837_v56, %v1599_v0  ;;  %v1314_v27 = vmax.f32 %v1252_v25, 0.0 }
 0x27c   : > { %v1261_v57 = vpop.f32.mrf.mxu0 }
 0x27d   : > { %v1317_v20 = vmax.f32 %v1267_v18, 0.0  ;;  %v1262_v21 = vadd.f32 %v1599_v0, %v1261_v57 }
 0x27e   : > { %v1840_v58 = vpop.f32.mrf.mxu0 }
 0x27f   : > { %v1277_v14 = vadd.f32 %v1840_v58, %v1599_v0  ;;  %v1316_v23 = vmax.f32 %v1262_v21, 0.0 }
 0x280   : > { %v1271_v59 = vpop.f32.mrf.mxu0 }
 0x281   : > { %v1319_v16 = vmax.f32 %v1277_v14, 0.0  ;;  %v1272_v17 = vadd.f32 %v1599_v0, %v1271_v59 }
 0x282   : > { %v1843_v60 = vpop.f32.mrf.mxu0 }
 0x283   : > { %v1287_v10 = vadd.f32 %v1843_v60, %v1599_v0  ;;  %v1318_v19 = vmax.f32 %v1272_v17, 0.0 }
 0x284   : > { %v1281_v61 = vpop.f32.mrf.mxu0 }
 0x285   : > { %v1321_v12 = vmax.f32 %v1287_v10, 0.0  ;;  %v1282_v13 = vadd.f32 %v1599_v0, %v1281_v61 }
 0x286   : > { %v1846_v62 = vpop.f32.mrf.mxu0 }
 0x287   : > { %v1297_v6 = vadd.f32 %v1846_v62, %v1599_v0  ;;  %v1320_v15 = vmax.f32 %v1282_v13, 0.0 }
 0x288   : > { %v1291_v63 = vpop.f32.mrf.mxu0 }
 0x289   : > { %v1323_v8 = vmax.f32 %v1297_v6, 0.0  ;;  %v1292_v9 = vadd.f32 %v1599_v0, %v1291_v63 }
 0x28a   : > { %v1849_v1 = vpop.f32.mrf.mxu0 }
 0x28b   : > { %v1307_v2 = vadd.f32 %v1849_v1, %v1599_v0  ;;  %v1322_v11 = vmax.f32 %v1292_v9, 0.0 }
 0x28c   : > { %v1301_v3 = vpop.f32.mrf.mxu0 }
 0x28d   : > { %v1325_v4 = vmax.f32 %v1307_v2, 0.0  ;;  %v1302_v5 = vadd.f32 %v1599_v0, %v1301_v3 }
 0x28f   : > { %1851 = vmatpush3.xpose.msk.msra.mxu1 %vm862_vm4, %v1325_v4  ;;  %v1324_v7 = vmax.f32 %v1302_v5, 0.0 }
 0x290   : > { %1852 = vmatprep.subr.mxu1 %v1992_v38 }
 0x293   : > { %1853 = vmatpush3.xpose.msk.msra.mxu1 %vm862_vm4, %v1324_v7 }
 0x294   : > { %1854 = vmatprep.subr.mxu1 %v1992_v38 }
 0x297   : > { %1855 = vmatpush3.xpose.msk.msra.mxu1 %vm862_vm4, %v1323_v8 }
 0x298   : > { %1856 = vmatprep.subr.mxu1 %v1992_v38 }
 0x29b   : > { %1857 = vmatpush3.xpose.msk.msra.mxu1 %vm862_vm4, %v1322_v11 }
 0x29c   : > { %1858 = vmatprep.subr.mxu1 %v1992_v38 }
 0x29f   : > { %1859 = vmatpush3.xpose.msk.msra.mxu1 %vm862_vm4, %v1321_v12 }
 0x2a0   : > { %1860 = vmatprep.subr.mxu1 %v1992_v38 }
 0x2a3   : > { %1861 = vmatpush3.xpose.msk.msra.mxu1 %vm862_vm4, %v1320_v15 }
 0x2a4   : > { %1862 = vmatprep.subr.mxu1 %v1992_v38 }
 0x2a7   : > { %1863 = vmatpush3.xpose.msk.msra.mxu1 %vm862_vm4, %v1319_v16 }
 0x2a8   : > { %1864 = vmatprep.subr.mxu1 %v1992_v38 }
 0x2ab   : > { %1865 = vmatpush3.xpose.msk.msra.mxu1 %vm862_vm4, %v1318_v19 }
 0x2ac   : > { %1866 = vmatprep.subr.mxu1 %v1992_v38 }
 0x2af   : > { %1867 = vmatpush3.xpose.msk.msra.mxu1 %vm862_vm4, %v1317_v20 }
 0x2b0   : > { %1868 = vmatprep.subr.mxu1 %v1992_v38 }
 0x2b3   : > { %1869 = vmatpush3.xpose.msk.msra.mxu1 %vm862_vm4, %v1316_v23 }
 0x2b4   : > { %1870 = vmatprep.subr.mxu1 %v1992_v38 }
 0x2b7   : > { %1871 = vmatpush3.xpose.msk.msra.mxu1 %vm862_vm4, %v1315_v24 }
 0x2b8   : > { %1872 = vmatprep.subr.mxu1 %v1992_v38 }
 0x2bb   : > { %1873 = vmatpush3.xpose.msk.msra.mxu1 %vm862_vm4, %v1314_v27 }
 0x2bc   : > { %1874 = vmatprep.subr.mxu1 %v1992_v38 }
 0x2bf   : > { %1875 = vmatpush3.xpose.msk.msra.mxu1 %vm862_vm4, %v1313_v28 }
 0x2c0   : > { %1876 = vmatprep.subr.mxu1 %v1992_v38 }
 0x2c3   : > { %1877 = vmatpush3.xpose.msk.msra.mxu1 %vm862_vm4, %v1312_v31 }
 0x2c4   : > { %1878 = vmatprep.subr.mxu1 %v1992_v38 }
 0x2c7   : > { %1879 = vmatpush3.xpose.msk.msra.mxu1 %vm862_vm4, %v1311_v32 }
 0x2c8   : > { %1880 = vmatprep.subr.mxu1 %v1992_v38 }
 0x2cb   : > { %1881 = vmatpush3.xpose.msk.msra.mxu1 %vm862_vm4, %v1310_v37 }
 0x2ce   : > { %1883 = vmatmul.mubr.msk.f32.vlgmr.msra.gmra.mxu1 %vm862_vm4, %v1326_v39 }
 0x38e   : > { %v1454_v45 = vpop.f32.mrf.mxu1 }
 0x38f   : > { %v1455_v46 = vadd.f32 %v1454_v45, %v1336_v34 }
 0x390   : > { %v1884_v47 = vpop.f32.mrf.mxu1 }
 0x391   : > { %1458 = vst [vmem:[%s397_s10] sm:$0x1] %v1455_v46 }
 0x392   : > { %1943 = shalt.err (!%p1940_p3)
}
 0x393   : > { %s1944_s15 = scalar_lea.hbm %s2351_s12, 16  ;;  %s1948_s26 = scalar_lea.hbm %s2397_s11, 32 }
 0x394   : > { %p1945_p4 = scmp.ne.s32.totalorder %s2351_s12, %s1944_s15  ;;  %p1949_p9 = scmp.lt.s32.totalorder %s2351_s12, %s2397_s11 }
 0x395   : > { %p1950_p10 = scmp.lt.s32.totalorder %s1948_s26, %s1944_s15 }
 0x396   : > { %p1946_p7 = pnand %p1945_p4, %p2094_p5 }
 0x397   : > { %p1951_p11 = por %p1950_p10, %p1949_p9 }
 0x398   : > { %p1947_p8 = pneg %p1946_p7 }
 0x39a   : > { %p1952_p12 = pnand %p1951_p11, %p1947_p8 }
 0x39c   : > { %1955 = shalt.err (!%p1952_p12)
}
 0x39d   : > { %1887 = dma.vmem_to_hbm [thread:$0]  (%p2094_p5), %s1473_s25, 16, %s2351_s12, %s1460_s13  }
 0x39e PF: > { %p1893_p13 = scmp.ge.s32.totalorder %s1990_s22, 2  ;;  %s1484_s14 = sand.u32 1, %s1978_s19  }
 0x39f   : > { %s1485_s17 = scalar_lea.sflag [#allocation4], %s1484_s14 }
 0x3a0   : > { %p1890_p0 = pnand %p1893_p13, %p2098_p6 }
 0x3a2   : > { %p1891_p1 = pneg %p1890_p0 }
 0x3a4   : > { %1973 = dma.done.wait (%p1891_p1), %s1485_s17, 16  }
 0x3a5   : > { %1975 = vsyncadd (%p1891_p1), %s1485_s17, 4294967280  ;;  %p23_p2 = scmp.ge.s32.totalorder %s2082_s24, 4   ;;  %s2400_s19 = smov %s1982_s20 }
 0x3a6   : > { %s2401_s20 = smov %s1986_s21  ;;  %s2402_s21 = smov %s2092_s27 }
 0x3a7   : > { %s2403_s22 = smov %s2082_s24  ;;  %25 = sbr.rel (!%p23_p2) target bundleno = 6 (0x6), region = 102 }
 0x3ac   :  { %1489 = vsyncpa [#allocation4], 1 }
 0x3ad   :  { %1491 = vsyncpa [#allocation4 + $0x1], 1 }

</bundles_post_ra>
